<compile_context>
chip_gen: v7x
topology: tpu7x:2x2x1
jax: 0.10.0
libtpu: 0.0.40
codegen_flags: <defaults>
</compile_context>

<pallas_src>
import functools

import jax
import jax.numpy as jnp
from jax.experimental import pallas as pl
from jax.experimental.pallas import tpu as pltpu


def tanh_dot_kernel(x_ref,
                    w1_ref, b1_ref, w2_ref, b2_ref,
                    w3_ref, b3_ref, w4_ref, b4_ref,
                    o_ref, *, n_hidden):
    """Fused block-diagonal twin tanh towers + cosine, transposed layout.

    x_ref : (2*n_inputs, TILE_B)  compute dtype, batch on the lane axis
    wK_ref: blockdiag(W1_k, W2_k)^T, (2*n_hidden, 2*n_in|2*n_hidden)
    bK_ref: (2*n_hidden, 1) float32
    o_ref : (1, TILE_B) float32 -- lane-dense row of cosine similarities
    """
    layers = ((w1_ref, b1_ref), (w2_ref, b2_ref),
              (w3_ref, b3_ref), (w4_ref, b4_ref))
    h = x_ref[...]
    for idx, (w_ref, b_ref) in enumerate(layers):
        # MXU matmul (bf16 or f32 inputs), f32 accumulate; bias add + tanh in f32.
        z = jnp.dot(w_ref[...], h, preferred_element_type=jnp.float32)
        h = jnp.tanh(z + b_ref[...])
        if idx < len(layers) - 1:
            # Keep inter-layer activations in the compute dtype (bf16 on
            # v6e/v7x); last layer stays f32 for the cosine math.
            h = h.astype(w_ref.dtype)
        # Dropout(0.2) after layers 1..3 is identity in eval mode.

    # Cosine similarity along the feature (sublane) axis; cheap sublane reduce.
    h1 = h[:n_hidden, :]                      # (n_hidden, TILE_B) f32
    h2 = h[n_hidden:, :]
    eps = jnp.float32(1e-8)
    dot = jnp.sum(h1 * h2, axis=0, keepdims=True)                       # (1, T)
    n1 = jnp.maximum(jnp.sqrt(jnp.sum(h1 * h1, axis=0, keepdims=True)), eps)
    n2 = jnp.maximum(jnp.sqrt(jnp.sum(h2 * h2, axis=0, keepdims=True)), eps)
    o_ref[...] = (dot / (n1 * n2)).astype(o_ref.dtype)


def _block_diag_t(wa, wb, dtype):
    """Two (in, out) weights -> transposed block-diagonal (2*out, 2*in)."""
    oa, ia = wa.shape[1], wa.shape[0]
    ob, ib = wb.shape[1], wb.shape[0]
    top = jnp.concatenate([wa.T, jnp.zeros((oa, ib), wa.dtype)], axis=1)
    bot = jnp.concatenate([jnp.zeros((ob, ia), wb.dtype), wb.T], axis=1)
    return jnp.concatenate([top, bot], axis=0).astype(dtype)


def _cat_bias(ba, bb):
    """(1, out) biases -> stacked (2*out, 1) float32 column."""
    return jnp.concatenate(
        [ba.reshape(-1), bb.reshape(-1)]).reshape(-1, 1).astype(jnp.float32)


def _default_use_bf16():
    """bf16 compute on v6e/v7x; f32 on v5e and older (no bf16 VPU/EUP)."""
    try:
        kind = jax.devices()[0].device_kind.lower()
    except Exception:
        return False
    return not any(tag in kind for tag in ("v2", "v3", "v4", "v5"))


def tanh_dot_product_forward(x1, x2, params1, params2, *, tile_b=4096,
                             use_bf16=None):
    """TanhDotProduct forward (eval mode, bilinear=False).

    x1, x2 : (B, n_inputs) float32.
    params1/params2 : (w1, b1, w2, b2, w3, b3, w4, b4) per tower, weights
    stored (in_features, out_features), biases (1, out_features).
    Returns cosine_similarity(tower1(x1), tower2(x2)) as (B, 1) float32.
    """
    B, n_inputs = x1.shape
    n_hidden = params1[0].shape[1]

    if use_bf16 is None:
        use_bf16 = _default_use_bf16()
    cdt = jnp.bfloat16 if use_bf16 else jnp.float32

    # --- batch tiling --------------------------------------------------------
    tile_b = max(128, (int(tile_b) // 128) * 128)
    n_slabs = pl.cdiv(B, 128)                   # number of 128-row batch slabs
    tile_slabs = min(tile_b // 128, n_slabs)
    if n_slabs > 1:
        # Keep >= 2 grid steps so the 'parallel' batch axis actually splits
        # across the two TensorCores on v7x (megacore).
        tile_slabs = max(1, min(tile_slabs, pl.cdiv(n_slabs, 2)))
    tile_b = tile_slabs * 128
    b_pad = pl.cdiv(B, tile_b) * tile_b

    # --- transposed, tower-fused inputs & parameters (trace-time prep) -------
    x_t = jnp.concatenate([x1, x2], axis=1).T           # (2*n_inputs, B)
    if b_pad != B:
        x_t = jnp.pad(x_t, ((0, 0), (0, b_pad - B)))
    x_t = x_t.astype(cdt)

    w11, b11, w12, b12, w13, b13, w14, b14 = params1
    w21, b21, w22, b22, w23, b23, w24, b24 = params2
    fused = (
        _block_diag_t(w11, w21, cdt), _cat_bias(b11, b21),
        _block_diag_t(w12, w22, cdt), _cat_bias(b12, b22),
        _block_diag_t(w13, w23, cdt), _cat_bias(b13, b23),
        _block_diag_t(w14, w24, cdt), _cat_bias(b14, b24),
    )

    grid = (b_pad // tile_b,)

    # x tiles stream over the batch axis; fused weights/biases use constant
    # index maps so they are fetched once and stay VMEM-resident for the grid.
    x_spec = pl.BlockSpec((2 * n_inputs, tile_b), lambda i: (0, i))

    def resident(a):
        return pl.BlockSpec(a.shape, lambda i: (0, 0))

    in_specs = [x_spec] + [resident(a) for a in fused]

    out = pl.pallas_call(
        functools.partial(tanh_dot_kernel, n_hidden=n_hidden),
        out_shape=jax.ShapeDtypeStruct((1, b_pad), jnp.float32),
        grid=grid,
        in_specs=in_specs,
        out_specs=pl.BlockSpec((1, tile_b), lambda i: (0, i)),
        compiler_params=pltpu.CompilerParams(
            dimension_semantics=("parallel",),    # megacore split on v7x
            vmem_limit_bytes=32 * 1024 * 1024,    # safe on v5e/v6e/v7x
        ),
    )(x_t, *fused)

    return out[0, :B].reshape(B, 1)


def init_tower_params(n_inputs, n_hidden, key):
    """Deterministic synthetic parameters for one TanhTower(n_inputs, n_hidden)."""
    ks = jax.random.split(key, 8)
    s = 0.1
    shapes = [(n_inputs, n_hidden), (1, n_hidden),
              (n_hidden, n_hidden), (1, n_hidden),
              (n_hidden, n_hidden), (1, n_hidden),
              (n_hidden, n_hidden), (1, n_hidden)]
    return tuple(s * jax.random.normal(k, shp, jnp.float32)
                 for k, shp in zip(ks, shapes))


def reference_forward(x1, x2, params1, params2):
    hp = jax.lax.Precision.HIGHEST

    def tower(x, p):
        w1, b1, w2, b2, w3, b3, w4, b4 = p
        h = x
        for w, b in ((w1, b1), (w2, b2), (w3, b3), (w4, b4)):
            h = jnp.tanh(jnp.dot(h, w, precision=hp) + b)
        return h

    h1 = tower(x1, params1)
    h2 = tower(x2, params2)
    eps = 1e-8
    dot = jnp.sum(h1 * h2, axis=1, keepdims=True)
    n1 = jnp.maximum(jnp.sqrt(jnp.sum(h1 * h1, axis=1, keepdims=True)), eps)
    n2 = jnp.maximum(jnp.sqrt(jnp.sum(h2 * h2, axis=1, keepdims=True)), eps)
    return dot / (n1 * n2)


if __name__ == "__main__":
    n_inputs, n_hidden, batch = 16, 32, 8

    key = jax.random.PRNGKey(0)
    k_x1, k_x2, k_p1, k_p2 = jax.random.split(key, 4)
    x1 = jax.random.normal(k_x1, (batch, n_inputs), jnp.float32)
    x2 = jax.random.normal(k_x2, (batch, n_inputs), jnp.float32)
    params1 = init_tower_params(n_inputs, n_hidden, k_p1)
    params2 = init_tower_params(n_inputs, n_hidden, k_p2)

    ref = reference_forward(x1, x2, params1, params2)

    # f32 path: accuracy check against the pure-JAX reference.
    out = jax.block_until_ready(
        tanh_dot_product_forward(x1, x2, params1, params2, use_bf16=False))
    assert out.shape == (batch, 1)
    err = float(jnp.max(jnp.abs(out - ref)))
    assert err < 5e-3, err

    # Default path (bf16 compute on v6e/v7x, f32 on v5e and older): smoke check.
    out_auto = jax.block_until_ready(
        tanh_dot_product_forward(x1, x2, params1, params2))
    assert out_auto.shape == (batch, 1)
    assert bool(jnp.all(jnp.isfinite(out_auto)))
    assert float(jnp.max(jnp.abs(out_auto - ref))) < 1e-1

    print("KERNEL_OK")
</pallas_src>

<mosaic_0001>
module attributes {stable_mosaic.version = 11 : i64} {
  func.func @tanh_dot_kernel(%arg0: i32, %arg1: memref<32x128xf32, #tpu.memory_space<vmem>>, %arg2: memref<64x32xf32, #tpu.memory_space<vmem>>, %arg3: memref<64x1xf32, #tpu.memory_space<vmem>>, %arg4: memref<64x64xf32, #tpu.memory_space<vmem>>, %arg5: memref<64x1xf32, #tpu.memory_space<vmem>>, %arg6: memref<64x64xf32, #tpu.memory_space<vmem>>, %arg7: memref<64x1xf32, #tpu.memory_space<vmem>>, %arg8: memref<64x64xf32, #tpu.memory_space<vmem>>, %arg9: memref<64x1xf32, #tpu.memory_space<vmem>>, %arg10: memref<1x128xf32, #tpu.memory_space<vmem>>) attributes {dimension_semantics = [#tpu.dimension_semantics<parallel>], iteration_bounds = array<i64: 1>, scalar_prefetch = 0 : i64, scratch_operands = 0 : i64, tpu.core_type = #tpu.core_type<tc>, window_params = [{transform_indices = @transform_0, window_bounds = array<i64: 32, 128>}, {pipeline_mode = #tpu.pipeline_mode<synchronous>, transform_indices = @transform_1, window_bounds = array<i64: 64, 32>}, {pipeline_mode = #tpu.pipeline_mode<synchronous>, transform_indices = @transform_2, window_bounds = array<i64: 64, 1>}, {pipeline_mode = #tpu.pipeline_mode<synchronous>, transform_indices = @transform_3, window_bounds = array<i64: 64, 64>}, {pipeline_mode = #tpu.pipeline_mode<synchronous>, transform_indices = @transform_4, window_bounds = array<i64: 64, 1>}, {pipeline_mode = #tpu.pipeline_mode<synchronous>, transform_indices = @transform_5, window_bounds = array<i64: 64, 64>}, {pipeline_mode = #tpu.pipeline_mode<synchronous>, transform_indices = @transform_6, window_bounds = array<i64: 64, 1>}, {pipeline_mode = #tpu.pipeline_mode<synchronous>, transform_indices = @transform_7, window_bounds = array<i64: 64, 64>}, {pipeline_mode = #tpu.pipeline_mode<synchronous>, transform_indices = @transform_8, window_bounds = array<i64: 64, 1>}, {transform_indices = @transform_9, window_bounds = array<i64: 1, 128>}]} {
    %c0 = arith.constant 0 : index
    %c0_0 = arith.constant 0 : index
    %0 = vector.load %arg1[%c0, %c0_0] : memref<32x128xf32, #tpu.memory_space<vmem>>, vector<32x128xf32>
    %c0_1 = arith.constant 0 : index
    %c0_2 = arith.constant 0 : index
    %1 = vector.load %arg2[%c0_1, %c0_2] : memref<64x32xf32, #tpu.memory_space<vmem>>, vector<64x32xf32>
    %cst = arith.constant dense<0.000000e+00> : vector<64x128xf32>
    %2 = tpu.matmul %1, %0, %cst {dimension_numbers = #tpu.dot_dimension_numbers<[1], [0], [0], [1], [0, 0, 1, 1], [], []>} : vector<64x32xf32>, vector<32x128xf32>, vector<64x128xf32> -> vector<64x128xf32>
    %c0_3 = arith.constant 0 : index
    %c0_4 = arith.constant 0 : index
    %3 = vector.load %arg3[%c0_3, %c0_4] : memref<64x1xf32, #tpu.memory_space<vmem>>, vector<64x1xf32>
    %4 = vector.broadcast %3 : vector<64x1xf32> to vector<64x128xf32>
    %5 = arith.addf %2, %4 : vector<64x128xf32>
    %6 = math.tanh %5 : vector<64x128xf32>
    %c0_5 = arith.constant 0 : index
    %c0_6 = arith.constant 0 : index
    %7 = vector.load %arg4[%c0_5, %c0_6] : memref<64x64xf32, #tpu.memory_space<vmem>>, vector<64x64xf32>
    %cst_7 = arith.constant dense<0.000000e+00> : vector<64x128xf32>
    %8 = tpu.matmul %7, %6, %cst_7 {dimension_numbers = #tpu.dot_dimension_numbers<[1], [0], [0], [1], [0, 0, 1, 1], [], []>} : vector<64x64xf32>, vector<64x128xf32>, vector<64x128xf32> -> vector<64x128xf32>
    %c0_8 = arith.constant 0 : index
    %c0_9 = arith.constant 0 : index
    %9 = vector.load %arg5[%c0_8, %c0_9] : memref<64x1xf32, #tpu.memory_space<vmem>>, vector<64x1xf32>
    %10 = vector.broadcast %9 : vector<64x1xf32> to vector<64x128xf32>
    %11 = arith.addf %8, %10 : vector<64x128xf32>
    %12 = math.tanh %11 : vector<64x128xf32>
    %c0_10 = arith.constant 0 : index
    %c0_11 = arith.constant 0 : index
    %13 = vector.load %arg6[%c0_10, %c0_11] : memref<64x64xf32, #tpu.memory_space<vmem>>, vector<64x64xf32>
    %cst_12 = arith.constant dense<0.000000e+00> : vector<64x128xf32>
    %14 = tpu.matmul %13, %12, %cst_12 {dimension_numbers = #tpu.dot_dimension_numbers<[1], [0], [0], [1], [0, 0, 1, 1], [], []>} : vector<64x64xf32>, vector<64x128xf32>, vector<64x128xf32> -> vector<64x128xf32>
    %c0_13 = arith.constant 0 : index
    %c0_14 = arith.constant 0 : index
    %15 = vector.load %arg7[%c0_13, %c0_14] : memref<64x1xf32, #tpu.memory_space<vmem>>, vector<64x1xf32>
    %16 = vector.broadcast %15 : vector<64x1xf32> to vector<64x128xf32>
    %17 = arith.addf %14, %16 : vector<64x128xf32>
    %18 = math.tanh %17 : vector<64x128xf32>
    %c0_15 = arith.constant 0 : index
    %c0_16 = arith.constant 0 : index
    %19 = vector.load %arg8[%c0_15, %c0_16] : memref<64x64xf32, #tpu.memory_space<vmem>>, vector<64x64xf32>
    %cst_17 = arith.constant dense<0.000000e+00> : vector<64x128xf32>
    %20 = tpu.matmul %19, %18, %cst_17 {dimension_numbers = #tpu.dot_dimension_numbers<[1], [0], [0], [1], [0, 0, 1, 1], [], []>} : vector<64x64xf32>, vector<64x128xf32>, vector<64x128xf32> -> vector<64x128xf32>
    %c0_18 = arith.constant 0 : index
    %c0_19 = arith.constant 0 : index
    %21 = vector.load %arg9[%c0_18, %c0_19] : memref<64x1xf32, #tpu.memory_space<vmem>>, vector<64x1xf32>
    %22 = vector.broadcast %21 : vector<64x1xf32> to vector<64x128xf32>
    %23 = arith.addf %20, %22 : vector<64x128xf32>
    %24 = math.tanh %23 : vector<64x128xf32>
    %25 = vector.extract_strided_slice %24 {offsets = [0, 0], sizes = [32, 128], strides = [1, 1]} : vector<64x128xf32> to vector<32x128xf32>
    %26 = vector.extract_strided_slice %24 {offsets = [32, 0], sizes = [32, 128], strides = [1, 1]} : vector<64x128xf32> to vector<32x128xf32>
    %27 = arith.mulf %25, %26 : vector<32x128xf32>
    %cst_20 = arith.constant dense<0.000000e+00> : vector<128xf32>
    %28 = vector.multi_reduction <add>, %27, %cst_20 [0] : vector<32x128xf32> to vector<128xf32>
    %29 = vector.shape_cast %28 : vector<128xf32> to vector<1x128xf32>
    %30 = arith.mulf %25, %25 : vector<32x128xf32>
    %cst_21 = arith.constant dense<0.000000e+00> : vector<128xf32>
    %31 = vector.multi_reduction <add>, %30, %cst_21 [0] : vector<32x128xf32> to vector<128xf32>
    %32 = vector.shape_cast %31 : vector<128xf32> to vector<1x128xf32>
    %33 = math.sqrt %32 : vector<1x128xf32>
    %cst_22 = arith.constant 9.99999993E-9 : f32
    %34 = vector.broadcast %cst_22 : f32 to vector<1x128xf32>
    %35 = arith.maximumf %33, %34 : vector<1x128xf32>
    %36 = arith.mulf %26, %26 : vector<32x128xf32>
    %cst_23 = arith.constant dense<0.000000e+00> : vector<128xf32>
    %37 = vector.multi_reduction <add>, %36, %cst_23 [0] : vector<32x128xf32> to vector<128xf32>
    %38 = vector.shape_cast %37 : vector<128xf32> to vector<1x128xf32>
    %39 = math.sqrt %38 : vector<1x128xf32>
    %cst_24 = arith.constant 9.99999993E-9 : f32
    %40 = vector.broadcast %cst_24 : f32 to vector<1x128xf32>
    %41 = arith.maximumf %39, %40 : vector<1x128xf32>
    %42 = arith.mulf %35, %41 : vector<1x128xf32>
    %43 = arith.divf %29, %42 : vector<1x128xf32>
    %c0_25 = arith.constant 0 : index
    %c0_26 = arith.constant 0 : index
    %44 = vector.load %arg10[%c0_25, %c0_26] : memref<1x128xf32, #tpu.memory_space<vmem>>, vector<1x128xf32>
    tpu.vector_store %arg10[%c0_25, %c0_26], %43 {strides = array<i32>} : memref<1x128xf32, #tpu.memory_space<vmem>>, vector<1x128xf32>,
    return
  }
  func.func @transform_0(%arg0: i32) -> (i32, i32) {
    %c0_i32 = arith.constant 0 : i32
    %c0_i32_0 = arith.constant 0 : i32
    return %c0_i32, %arg0 : i32, i32
  }
  func.func @transform_1(%arg0: i32) -> (i32, i32) {
    %c0_i32 = arith.constant 0 : i32
    %c0_i32_0 = arith.constant 0 : i32
    %c0_i32_1 = arith.constant 0 : i32
    return %c0_i32, %c0_i32_0 : i32, i32
  }
  func.func @transform_2(%arg0: i32) -> (i32, i32) {
    %c0_i32 = arith.constant 0 : i32
    %c0_i32_0 = arith.constant 0 : i32
    %c0_i32_1 = arith.constant 0 : i32
    return %c0_i32, %c0_i32_0 : i32, i32
  }
  func.func @transform_3(%arg0: i32) -> (i32, i32) {
    %c0_i32 = arith.constant 0 : i32
    %c0_i32_0 = arith.constant 0 : i32
    %c0_i32_1 = arith.constant 0 : i32
    return %c0_i32, %c0_i32_0 : i32, i32
  }
  func.func @transform_4(%arg0: i32) -> (i32, i32) {
    %c0_i32 = arith.constant 0 : i32
    %c0_i32_0 = arith.constant 0 : i32
    %c0_i32_1 = arith.constant 0 : i32
    return %c0_i32, %c0_i32_0 : i32, i32
  }
  func.func @transform_5(%arg0: i32) -> (i32, i32) {
    %c0_i32 = arith.constant 0 : i32
    %c0_i32_0 = arith.constant 0 : i32
    %c0_i32_1 = arith.constant 0 : i32
    return %c0_i32, %c0_i32_0 : i32, i32
  }
  func.func @transform_6(%arg0: i32) -> (i32, i32) {
    %c0_i32 = arith.constant 0 : i32
    %c0_i32_0 = arith.constant 0 : i32
    %c0_i32_1 = arith.constant 0 : i32
    return %c0_i32, %c0_i32_0 : i32, i32
  }
  func.func @transform_7(%arg0: i32) -> (i32, i32) {
    %c0_i32 = arith.constant 0 : i32
    %c0_i32_0 = arith.constant 0 : i32
    %c0_i32_1 = arith.constant 0 : i32
    return %c0_i32, %c0_i32_0 : i32, i32
  }
  func.func @transform_8(%arg0: i32) -> (i32, i32) {
    %c0_i32 = arith.constant 0 : i32
    %c0_i32_0 = arith.constant 0 : i32
    %c0_i32_1 = arith.constant 0 : i32
    return %c0_i32, %c0_i32_0 : i32, i32
  }
  func.func @transform_9(%arg0: i32) -> (i32, i32) {
    %c0_i32 = arith.constant 0 : i32
    %c0_i32_0 = arith.constant 0 : i32
    return %c0_i32, %arg0 : i32, i32
  }
}

</mosaic_0001>

<bundles_post_ra>
// kernel: tpu_custom_call.1
= control target key start
LH: loop header
LB: loop body
LE: loop exit
PB: predicated region body
PF: predicated region fallthrough
CT: control target
= control target key end

     0   :  { %vm93_vm0 = vcmask 261120   ;;  %v1242_v6 = vmov 0   ;;  %s1542_s0 = inlined_call_operand.vmem [shape: f32[32,128], index: 0, kind: input, shape index: {}]   ;;  %s1543_s1 = inlined_call_operand.vmem [shape: f32[64,32], index: 1, kind: input, shape index: {}]   ;;  %s1544_s2 = inlined_call_operand.vmem [shape: f32[64,1], index: 2, kind: input, shape index: {}]   ;;  %s1545_s3 = inlined_call_operand.vmem [shape: f32[64,64], index: 3, kind: input, shape index: {}]   ;;  %s1546_s4 = inlined_call_operand.vmem [shape: f32[64,1], index: 4, kind: input, shape index: {}]   ;;  %s1547_s5 = inlined_call_operand.vmem [shape: f32[64,64], index: 5, kind: input, shape index: {}]   ;;  %s1548_s6 = inlined_call_operand.vmem [shape: f32[64,1], index: 6, kind: input, shape index: {}]   ;;  %s1549_s7 = inlined_call_operand.vmem [shape: f32[64,64], index: 7, kind: input, shape index: {}]   ;;  %s1550_s8 = inlined_call_operand.vmem [shape: f32[64,1], index: 8, kind: input, shape index: {}]   ;;  %s1551_s9 = inlined_call_operand.hbm [shape: f32[1,128], index: 9, kind: output, shape index: {}]  }
   0x1   :  { %v33_v0 = vld [vmem:[%s1542_s0] sm:$0xff]  ;;  %v34_v1 = vld [vmem:[%s1542_s0 + $0x8] sm:$0xff]  ;;  %v35_v2 = vld [vmem:[%s1542_s0 + $0x10] sm:$0xff]  ;;  %1146 = vset.pattern.permute.xlu0 %v1242_v6  ;;  %1147 = vset.pattern.permute.xlu1 %v1242_v6 }
   0x2   :  { %v1080_v3 = vpack.c.bf16 %v34_v1, %v33_v0  ;;  %v36_v4 = vld [vmem:[%s1542_s0 + $0x18] sm:$0xff]  ;;  %v37_v5 = vld [vmem:[%s1543_s1] sm:$0xff]  ;;  %v47_v9 = vld [vmem:[%s1544_s2 + $0x10] sm:$0xff] }
   0x3   :  { %v1084_v7 = vpack.c.bf16 %v36_v4, %v35_v2  ;;  %984 = vmatprep.mubr.msk.f32.mxu0 %vm93_vm0, %v37_v5  ;;  %v45_v8 = vld [vmem:[%s1544_s2] sm:$0xff]  ;;  %65 = vperm.xlu1 %1147, %v47_v9   ;;  %v46_v10 = vld [vmem:[%s1544_s2 + $0x8] sm:$0xff]  ;;  %v48_v11 = vld [vmem:[%s1544_s2 + $0x18] sm:$0xff] }
   0x4   :  { %1081 = vmatprep.subr.bf16.mxu0 %v1080_v3  ;;  %55 = vperm.xlu0 %1146, %v45_v8   ;;  %v38_v12 = vld [vmem:[%s1543_s1 + $0x8] sm:$0xff]  ;;  %v39_v13 = vld [vmem:[%s1543_s1 + $0x10] sm:$0xff]  ;;  %v49_v14 = vld [vmem:[%s1544_s2 + $0x20] sm:$0xff] }
   0x5   :  { %1083 = vmatpush3.bf16.msra.mxu0 %v1080_v3  ;;  %v50_v15 = vld [vmem:[%s1544_s2 + $0x28] sm:$0xff]  ;;  %v40_v16 = vld [vmem:[%s1543_s1 + $0x18] sm:$0xff]  ;;  %v41_v17 = vld [vmem:[%s1543_s1 + $0x20] sm:$0xff] }
   0x6   :  { %1085 = vmatprep.subr.bf16.mxu0 %v1084_v7  ;;  %v51_v18 = vld [vmem:[%s1544_s2 + $0x30] sm:$0xff] }
   0x7   :  { %70 = vperm.xlu1 %1147, %v48_v11  }
   0x8   :  { %60 = vperm.xlu0 %1146, %v46_v10  }
   0x9   :  { %1087 = vmatpush3.bf16.msra.mxu0 %v1084_v7 }
   0xb   :  { %80 = vperm.xlu1 %1147, %v50_v15  }
   0xc   :  { %985 = vmatmul.mubr.msk.f32.vlgmr.msra.gmra.mrb[0].mxu0 %vm93_vm0, %v38_v12  ;;  %75 = vperm.xlu0 %1146, %v49_v14  }
   0xd   :  { %987 = vmatprep.mubr.msk.f32.mxu0 %vm93_vm0, %v39_v13 }
   0xe   :  { %14 = vsyncpa [#allocation3], 0  ;;  %v52_v19 = vld [vmem:[%s1544_s2 + $0x38] sm:$0xff]  ;;  %v42_v20 = vld [vmem:[%s1543_s1 + $0x28] sm:$0xff]  ;;  %vm287_vm1 = vcmask 523264  }
   0xf   :  { %v43_v21 = vld [vmem:[%s1543_s1 + $0x30] sm:$0xff]  ;;  %90 = vperm.xlu1 %1147, %v52_v19   ;;  %v239_v22 = vld [vmem:[%s1546_s4] sm:$0xff]  ;;  %v240_v23 = vld [vmem:[%s1546_s4 + $0x8] sm:$0xff] }
  0x10   :  { %988 = vmatmul.mubr.msk.f32.gmra.mrb[2].mxu0 %vm93_vm0, %v40_v16  ;;  %85 = vperm.xlu0 %1146, %v51_v18   ;;  %v44_v24 = vld [vmem:[%s1543_s1 + $0x38] sm:$0xff]  ;;  %v241_v25 = vld [vmem:[%s1546_s4 + $0x10] sm:$0xff]  ;;  %v243_v27 = vld [vmem:[%s1546_s4 + $0x20] sm:$0xff] }
  0x11   :  { %990 = vmatprep.mubr.msk.f32.mxu0 %vm93_vm0, %v41_v17  ;;  %v242_v26 = vld [vmem:[%s1546_s4 + $0x18] sm:$0xff]  ;;  %v244_v28 = vld [vmem:[%s1546_s4 + $0x28] sm:$0xff]  ;;  %v245_v29 = vld [vmem:[%s1546_s4 + $0x30] sm:$0xff] }
  0x12   :  { %v246_v30 = vld [vmem:[%s1546_s4 + $0x38] sm:$0xff]  ;;  %v433_v31 = vld [vmem:[%s1548_s6] sm:$0xff]  ;;  %v434_v32 = vld [vmem:[%s1548_s6 + $0x8] sm:$0xff] }
  0x13   :  { %254 = vperm.xlu1 %1147, %v240_v23   ;;  %v435_v33 = vld [vmem:[%s1548_s6 + $0x10] sm:$0xff]  ;;  %v436_v34 = vld [vmem:[%s1548_s6 + $0x18] sm:$0xff]  ;;  %v437_v35 = vld [vmem:[%s1548_s6 + $0x20] sm:$0xff] }
  0x14   :  { %991 = vmatmul.mubr.msk.f32.gmra.mrb[4].mxu0 %vm93_vm0, %v42_v20  ;;  %249 = vperm.xlu0 %1146, %v239_v22   ;;  %v438_v36 = vld [vmem:[%s1548_s6 + $0x28] sm:$0xff]  ;;  %v439_v37 = vld [vmem:[%s1548_s6 + $0x30] sm:$0xff]  ;;  %v440_v38 = vld [vmem:[%s1548_s6 + $0x38] sm:$0xff] }
  0x15   :  { %993 = vmatprep.mubr.msk.f32.mxu0 %vm93_vm0, %v43_v21  ;;  %v626_v39 = vld [vmem:[%s1550_s8] sm:$0xff]  ;;  %v627_v40 = vld [vmem:[%s1550_s8 + $0x8] sm:$0xff]  ;;  %v628_v43 = vld [vmem:[%s1550_s8 + $0x10] sm:$0xff] }
  0x16   :  { %v630_v41 = vld [vmem:[%s1550_s8 + $0x20] sm:$0xff]  ;;  %v631_v42 = vld [vmem:[%s1550_s8 + $0x28] sm:$0xff]  ;;  %v632_v44 = vld [vmem:[%s1550_s8 + $0x30] sm:$0xff] }
  0x17   :  { %264 = vperm.xlu1 %1147, %v242_v26   ;;  %v629_v45 = vld [vmem:[%s1550_s8 + $0x18] sm:$0xff]  ;;  %v231_v47 = vld [vmem:[%s1545_s3] sm:$0xff]  ;;  %v232_v20 = vld [vmem:[%s1545_s3 + $0x8] sm:$0xff] }
  0x18   :  { %994 = vmatmul.mubr.msk.f32.gmra.mrb[6].mxu0 %vm93_vm0, %v44_v24  ;;  %259 = vperm.xlu0 %1146, %v241_v25   ;;  %v633_v46 = vld [vmem:[%s1550_s8 + $0x38] sm:$0xff]  ;;  %v233_v21 = vld [vmem:[%s1545_s3 + $0x10] sm:$0xff]  ;;  %v235_v23 = vld [vmem:[%s1545_s3 + $0x20] sm:$0xff] }
  0x19   :  { %1012 = vmatprep.mubr.msk.f32.mxu1 %vm287_vm1, %v231_v47  ;;  %v234_v22 = vld [vmem:[%s1545_s3 + $0x18] sm:$0xff]  ;;  %v236_v24 = vld [vmem:[%s1545_s3 + $0x28] sm:$0xff]  ;;  %v237_v25 = vld [vmem:[%s1545_s3 + $0x30] sm:$0xff] }
  0x1a   :  { %v238_v26 = vld [vmem:[%s1545_s3 + $0x38] sm:$0xff] }
  0x1b   :  { %274 = vperm.xlu1 %1147, %v244_v28  }
  0x1c   :  { %269 = vperm.xlu0 %1146, %v243_v27   ;;  %v425_v27 = vld [vmem:[%s1547_s5] sm:$0xff] }
  0x1d   :  { %1040 = vmatprep.mubr.msk.f32.mxu0 %vm287_vm1, %v425_v27 }
  0x1f   :  { %284 = vperm.xlu1 %1147, %v246_v30  }
  0x20   :  { %279 = vperm.xlu0 %1146, %v245_v29  }
  0x23   :  { %448 = vperm.xlu1 %1147, %v434_v32  }
  0x24   :  { %443 = vperm.xlu0 %1146, %v433_v31  }
  0x27   :  { %458 = vperm.xlu1 %1147, %v436_v34  }
  0x28   :  { %453 = vperm.xlu0 %1146, %v435_v33  }
  0x2b   :  { %468 = vperm.xlu1 %1147, %v438_v36  }
  0x2c   :  { %463 = vperm.xlu0 %1146, %v437_v35  }
  0x2f   :  { %478 = vperm.xlu1 %1147, %v440_v38  }
  0x30   :  { %473 = vperm.xlu0 %1146, %v439_v37  }
  0x33   :  { %641 = vperm.xlu1 %1147, %v627_v40  }
  0x34   :  { %636 = vperm.xlu0 %1146, %v626_v39  }
  0x37   :  { %661 = vperm.xlu1 %1147, %v631_v42  }
  0x38   :  { %656 = vperm.xlu0 %1146, %v630_v41  }
  0x3b   :  { %666 = vperm.xlu1 %1147, %v632_v44  }
  0x3c   :  { %646 = vperm.xlu0 %1146, %v628_v43  }
  0x3f   :  { %671 = vperm.xlu1 %1147, %v633_v46  }
  0x40   :  { %651 = vperm.xlu0 %1146, %v629_v45  }
  0x82   :  { %v66_v49 = vpop.permute.xlu1 %65 }
  0x83   :  { %v56_v48 = vpop.permute.xlu0 %55 }
  0x86   :  { %v71_v51 = vpop.permute.xlu1 %70 }
  0x87   :  { %v61_v50 = vpop.permute.xlu0 %60 }
  0x8a   :  { %v81_v59 = vpop.permute.xlu1 %80 }
  0x8b   :  { %v76_v61 = vpop.permute.xlu0 %75 }
  0x8e   :  { %v91_v2 = vpop.permute.xlu1 %90 }
  0x8f   :  { %v86_v5 = vpop.permute.xlu0 %85 }
  0x92   :  { %v255_v28 = vpop.permute.xlu1 %254 }
  0x93   :  { %v250_v29 = vpop.permute.xlu0 %249 }
  0x96   :  { %v265_v30 = vpop.permute.xlu1 %264 }
  0x97   :  { %v260_v32 = vpop.permute.xlu0 %259 }
  0x9a   :  { %v275_v39 = vpop.permute.xlu1 %274 }
  0x9b   :  { %v270_v41 = vpop.permute.xlu0 %269 }
  0x9e   :  { %v285_v46 = vpop.permute.xlu1 %284 }
  0xdf   :  { %v986_v52 = vpop.f32.mrb[0].mxu0 }
  0xe0   :  { %v190_v53 = vadd.f32 %v986_v52, %v61_v50  ;;  %v184_v54 = vpop.f32.mrb[1].mxu0 }
  0xe1   :  { %v185_v55 = vadd.f32 %v184_v54, %v56_v48 }
  0xe2   :  { %1148 = vtanh.f32 %v190_v53 }
  0xe3   :  { %1150 = vtanh.f32 %v185_v55  ;;  %v989_v56 = vpop.f32.mrb[2].mxu0 }
  0xe4   :  { %v200_v57 = vadd.f32 %v989_v56, %v71_v51  ;;  %v194_v58 = vpop.f32.mrb[3].mxu0 }
  0xe5   :  { %v195_v60 = vadd.f32 %v194_v58, %v66_v49  ;;  %v280_v49 = vpop.permute.xlu0 %279 }
  0xe6   :  { %1152 = vtanh.f32 %v200_v57 }
  0xe7   :  { %1154 = vtanh.f32 %v195_v60  ;;  %v992_v62 = vpop.f32.mrb[4].mxu0 }
  0xe8   :  { %v210_v63 = vadd.f32 %v992_v62, %v81_v59  ;;  %v204_v0 = vpop.f32.mrb[5].mxu0 }
  0xe9   :  { %v205_v1 = vadd.f32 %v204_v0, %v76_v61  ;;  %v426_v0 = vld [vmem:[%s1547_s5 + $0x8] sm:$0xff] }
  0xea   :  { %1156 = vtanh.f32 %v210_v63 }
  0xeb   :  { %1158 = vtanh.f32 %v205_v1  ;;  %v995_v3 = vpop.f32.mrb[6].mxu0  ;;  %v427_v1 = vld [vmem:[%s1547_s5 + $0x10] sm:$0xff] }
  0xec   :  { %v1149_v4 = vpop.eup %1148  ;;  %v220_v6 = vadd.f32 %v995_v3, %v91_v2  ;;  %v214_v7 = vpop.f32.mrb[7].mxu0  ;;  %v428_v2 = vld [vmem:[%s1547_s5 + $0x18] sm:$0xff]  ;;  %v429_v3 = vld [vmem:[%s1547_s5 + $0x20] sm:$0xff] }
  0xed   :  { %v1151_v8 = vpop.eup %1150  ;;  %v215_v9 = vadd.f32 %v214_v7, %v86_v5  ;;  %v431_v5 = vld [vmem:[%s1547_s5 + $0x30] sm:$0xff]  ;;  %v618_v7 = vld [vmem:[%s1549_s7] sm:$0xff] }
  0xee   :  { %1160 = vtanh.f32 %v220_v6  ;;  %v1088_v10 = vpack.c.bf16 %v1149_v4, %v1151_v8  ;;  %v430_v4 = vld [vmem:[%s1547_s5 + $0x28] sm:$0xff]  ;;  %v432_v6 = vld [vmem:[%s1547_s5 + $0x38] sm:$0xff]  ;;  %v620_v8 = vld [vmem:[%s1549_s7 + $0x10] sm:$0xff] }
  0xef   :  { %1162 = vtanh.f32 %v215_v9  ;;  %v449_v9 = vpop.permute.xlu1 %448 }
  0xf0   :  { %v1153_v11 = vpop.eup %1152  ;;  %1089 = vmatprep.subr.bf16.mxu1 %v1088_v10 }
  0xf1   :  { %v1155_v12 = vpop.eup %1154  ;;  %1091 = vmatpush3.bf16.msra.mxu1 %v1088_v10  ;;  %v444_v10 = vpop.permute.xlu0 %443 }
  0xf2   :  { %v1092_v13 = vpack.c.bf16 %v1153_v11, %v1155_v12 }
  0xf3   :  { %v459_v11 = vpop.permute.xlu1 %458 }
  0xf4   :  { %v1157_v14 = vpop.eup %1156  ;;  %1093 = vmatprep.subr.bf16.mxu1 %v1092_v13 }
  0xf5   :  { %v1159_v15 = vpop.eup %1158  ;;  %1095 = vmatpush3.bf16.msra.mxu1 %v1092_v13  ;;  %v454_v13 = vpop.permute.xlu0 %453 }
  0xf6   :  { %v1096_v16 = vpack.c.bf16 %v1157_v14, %v1159_v15 }
  0xf8   :  { %v1161_v17 = vpop.eup %1160  ;;  %1097 = vmatprep.subr.bf16.mxu1 %v1096_v16 }
  0xf9   :  { %v1163_v18 = vpop.eup %1162  ;;  %1099 = vmatpush3.bf16.msra.mxu1 %v1096_v16 }
  0xfa   :  { %v1100_v19 = vpack.c.bf16 %v1161_v17, %v1163_v18 }
  0xfc   :  { %1101 = vmatprep.subr.bf16.mxu1 %v1100_v19 }
  0xfd   :  { %1103 = vmatpush3.bf16.msra.mxu1 %v1100_v19 }
 0x100   :  { %1013 = vmatmul.mubr.msk.f32.vlgmr.msra.gmra.mrb[0].mxu1 %vm287_vm1, %v232_v20  ;;  %v469_v20 = vpop.permute.xlu1 %468 }
 0x101   :  { %1015 = vmatprep.mubr.msk.f32.mxu1 %vm287_vm1, %v233_v21 }
 0x104   :  { %1016 = vmatmul.mubr.msk.f32.gmra.mrb[2].mxu1 %vm287_vm1, %v234_v22  ;;  %v464_v22 = vpop.permute.xlu0 %463  ;;  %v479_v27 = vpop.permute.xlu1 %478 }
 0x105   :  { %1018 = vmatprep.mubr.msk.f32.mxu1 %vm287_vm1, %v235_v23 }
 0x108   :  { %1019 = vmatmul.mubr.msk.f32.gmra.mrb[4].mxu1 %vm287_vm1, %v236_v24 }
 0x109   :  { %1021 = vmatprep.mubr.msk.f32.mxu1 %vm287_vm1, %v237_v25 }
 0x10c   :  { %1022 = vmatmul.mubr.msk.f32.gmra.mrb[6].mxu1 %vm287_vm1, %v238_v26 }
 0x10d   :  { %1071 = vmatprep.mubr.msk.f32.mxu1 %vm287_vm1, %v620_v8 }
 0x1d3   :  { %v1014_v31 = vpop.f32.mrb[0].mxu1 }
 0x1d4   :  { %v384_v33 = vadd.f32 %v1014_v31, %v255_v28  ;;  %v378_v34 = vpop.f32.mrb[1].mxu1 }
 0x1d5   :  { %v379_v35 = vadd.f32 %v378_v34, %v250_v29 }
 0x1d6   :  { %1164 = vtanh.f32 %v384_v33 }
 0x1d7   :  { %1166 = vtanh.f32 %v379_v35  ;;  %v1017_v36 = vpop.f32.mrb[2].mxu1 }
 0x1d8   :  { %v394_v37 = vadd.f32 %v1017_v36, %v265_v30  ;;  %v388_v38 = vpop.f32.mrb[3].mxu1  ;;  %v474_v30 = vpop.permute.xlu0 %473 }
 0x1d9   :  { %v389_v40 = vadd.f32 %v388_v38, %v260_v32 }
 0x1da   :  { %1168 = vtanh.f32 %v394_v37 }
 0x1db   :  { %1170 = vtanh.f32 %v389_v40  ;;  %v1020_v42 = vpop.f32.mrb[4].mxu1 }
 0x1dc   :  { %v404_v43 = vadd.f32 %v1020_v42, %v275_v39  ;;  %v398_v44 = vpop.f32.mrb[5].mxu1 }
 0x1dd   :  { %v399_v45 = vadd.f32 %v398_v44, %v270_v41 }
 0x1de   :  { %1172 = vtanh.f32 %v404_v43 }
 0x1df   :  { %1174 = vtanh.f32 %v399_v45  ;;  %v1023_v47 = vpop.f32.mrb[6].mxu1  ;;  %v619_v45 = vld [vmem:[%s1549_s7 + $0x8] sm:$0xff] }
 0x1e0   :  { %v1165_v48 = vpop.eup %1164  ;;  %v414_v50 = vadd.f32 %v1023_v47, %v285_v46  ;;  %v408_v51 = vpop.f32.mrb[7].mxu1  ;;  %v621_v46 = vld [vmem:[%s1549_s7 + $0x18] sm:$0xff]  ;;  %v622_v47 = vld [vmem:[%s1549_s7 + $0x20] sm:$0xff] }
 0x1e1   :  { %v1167_v52 = vpop.eup %1166  ;;  %v409_v53 = vadd.f32 %v408_v51, %v280_v49  ;;  %v624_v49 = vld [vmem:[%s1549_s7 + $0x30] sm:$0xff]  ;;  %v637_v51 = vpop.permute.xlu0 %636 }
 0x1e2   :  { %1176 = vtanh.f32 %v414_v50  ;;  %v1104_v54 = vpack.c.bf16 %v1165_v48, %v1167_v52  ;;  %v623_v48 = vld [vmem:[%s1549_s7 + $0x28] sm:$0xff]  ;;  %v625_v50 = vld [vmem:[%s1549_s7 + $0x38] sm:$0xff]  ;;  %s1243_s7 = smov [#allocation2]  }
 0x1e3   :  { %1178 = vtanh.f32 %v409_v53  ;;  %v642_v53 = vpop.permute.xlu1 %641  ;;  %s876_s17 = sshll.u32 %s1243_s7, 4  ;;  %s877_s17 = int_to_ptr.vmem [resolvable:$true] %s876_s17 }
 0x1e4   :  { %v1169_v55 = vpop.eup %1168  ;;  %1105 = vmatprep.subr.bf16.mxu0 %v1104_v54  ;;  %s1218_s6 = scalar_lea.vmem %s877_s17, 16  ;;  %s1222_s18 = scalar_lea.vmem %s877_s17, 32 }
 0x1e5   :  { %v1171_v56 = vpop.eup %1170  ;;  %1107 = vmatpush3.bf16.msra.mxu0 %v1104_v54  ;;  %v657_v52 = vpop.permute.xlu0 %656  ;;  %p1219_p0 = scmp.ne.s32.totalorder %s877_s17, %s1218_s6  ;;  %p1223_p1 = scmp.lt.s32.totalorder %s877_s17, %s877_s17 }
 0x1e6   :  { %v1108_v57 = vpack.c.bf16 %v1169_v55, %v1171_v56  ;;  %p1224_p2 = scmp.lt.s32.totalorder %s1222_s18, %s1218_s6 }
 0x1e7   :  { %v662_v55 = vpop.permute.xlu1 %661 }
 0x1e8   :  { %v1173_v58 = vpop.eup %1172  ;;  %1109 = vmatprep.subr.bf16.mxu0 %v1108_v57  ;;  %p1225_p3 = por %p1224_p2, %p1223_p1 }
 0x1e9   :  { %v1175_v59 = vpop.eup %1174  ;;  %1111 = vmatpush3.bf16.msra.mxu0 %v1108_v57  ;;  %v647_v54 = vpop.permute.xlu0 %646 }
 0x1ea   :  { %v1112_v60 = vpack.c.bf16 %v1173_v58, %v1175_v59  ;;  %p1226_p4 = pnand %p1225_p3, %p1219_p0 }
 0x1ec   :  { %v1177_v61 = vpop.eup %1176  ;;  %1113 = vmatprep.subr.bf16.mxu0 %v1112_v60 }
 0x1ed   :  { %v1179_v62 = vpop.eup %1178  ;;  %1115 = vmatpush3.bf16.msra.mxu0 %v1112_v60  ;;  %v652_v56 = vpop.permute.xlu0 %651 }
 0x1ee   :  { %v1116_v63 = vpack.c.bf16 %v1177_v61, %v1179_v62 }
 0x1f0   :  { %1117 = vmatprep.subr.bf16.mxu0 %v1116_v63 }
 0x1f1   :  { %1119 = vmatpush3.bf16.msra.mxu0 %v1116_v63  ;;  %v667_v63 = vpop.permute.xlu1 %666 }
 0x1f4   :  { %1041 = vmatmul.mubr.msk.f32.vlgmr.msra.gmra.mrb[8].mxu0 %vm287_vm1, %v426_v0 }
 0x1f5   :  { %1043 = vmatprep.mubr.msk.f32.mxu0 %vm287_vm1, %v427_v1 }
 0x1f8   :  { %1044 = vmatmul.mubr.msk.f32.gmra.mrb[10].mxu0 %vm287_vm1, %v428_v2 }
 0x1f9   :  { %1046 = vmatprep.mubr.msk.f32.mxu0 %vm287_vm1, %v429_v3 }
 0x1fc   :  { %1047 = vmatmul.mubr.msk.f32.gmra.mrb[12].mxu0 %vm287_vm1, %v430_v4 }
 0x1fd   :  { %1049 = vmatprep.mubr.msk.f32.mxu0 %vm287_vm1, %v431_v5 }
 0x200   :  { %1050 = vmatmul.mubr.msk.f32.gmra.mrb[14].mxu0 %vm287_vm1, %v432_v6  ;;  %v672_v6 = vpop.permute.xlu1 %671 }
 0x201   :  { %1068 = vmatprep.mubr.msk.f32.mxu0 %vm287_vm1, %v618_v7 }
 0x2c7   :  { %v1042_v12 = vpop.f32.mrb[8].mxu0 }
 0x2c8   :  { %v577_v14 = vadd.f32 %v1042_v12, %v449_v9  ;;  %v571_v15 = vpop.f32.mrb[9].mxu0 }
 0x2c9   :  { %v572_v16 = vadd.f32 %v571_v15, %v444_v10 }
 0x2ca   :  { %1180 = vtanh.f32 %v577_v14 }
 0x2cb   :  { %1182 = vtanh.f32 %v572_v16  ;;  %v1045_v17 = vpop.f32.mrb[10].mxu0 }
 0x2cc   :  { %v587_v18 = vadd.f32 %v1045_v17, %v459_v11  ;;  %v581_v19 = vpop.f32.mrb[11].mxu0 }
 0x2cd   :  { %v582_v21 = vadd.f32 %v581_v19, %v454_v13 }
 0x2ce   :  { %1184 = vtanh.f32 %v587_v18 }
 0x2cf   :  { %1186 = vtanh.f32 %v582_v21  ;;  %v1048_v23 = vpop.f32.mrb[12].mxu0 }
 0x2d0   :  { %v597_v24 = vadd.f32 %v1048_v23, %v469_v20  ;;  %v591_v25 = vpop.f32.mrb[13].mxu0 }
 0x2d1   :  { %v592_v26 = vadd.f32 %v591_v25, %v464_v22 }
 0x2d2   :  { %1188 = vtanh.f32 %v597_v24 }
 0x2d3   :  { %1190 = vtanh.f32 %v592_v26  ;;  %v1051_v28 = vpop.f32.mrb[14].mxu0 }
 0x2d4   :  { %v1181_v29 = vpop.eup %1180  ;;  %v607_v31 = vadd.f32 %v1051_v28, %v479_v27  ;;  %v601_v32 = vpop.f32.mrb[15].mxu0 }
 0x2d5   :  { %v1183_v33 = vpop.eup %1182  ;;  %v602_v34 = vadd.f32 %v601_v32, %v474_v30 }
 0x2d6   :  { %1192 = vtanh.f32 %v607_v31  ;;  %v1120_v35 = vpack.c.bf16 %v1181_v29, %v1183_v33 }
 0x2d7   :  { %1194 = vtanh.f32 %v602_v34 }
 0x2d8   :  { %v1185_v36 = vpop.eup %1184  ;;  %1121 = vmatprep.subr.bf16.mxu0 %v1120_v35  ;;  %1136 = vmatprep.subr.bf16.mxu1 %v1120_v35 }
 0x2d9   :  { %v1187_v37 = vpop.eup %1186  ;;  %1123 = vmatpush3.bf16.msra.mxu0 %v1120_v35  ;;  %1140 = vmatpush3.bf16.msra.mxu1 %v1120_v35 }
 0x2da   :  { %v1124_v38 = vpack.c.bf16 %v1185_v36, %v1187_v37 }
 0x2dc   :  { %v1189_v39 = vpop.eup %1188  ;;  %1125 = vmatprep.subr.bf16.mxu0 %v1124_v38  ;;  %1137 = vmatprep.subr.bf16.mxu1 %v1124_v38 }
 0x2dd   :  { %v1191_v40 = vpop.eup %1190  ;;  %1127 = vmatpush3.bf16.msra.mxu0 %v1124_v38  ;;  %1141 = vmatpush3.bf16.msra.mxu1 %v1124_v38 }
 0x2de   :  { %v1128_v41 = vpack.c.bf16 %v1189_v39, %v1191_v40 }
 0x2e0   :  { %v1193_v42 = vpop.eup %1192  ;;  %1129 = vmatprep.subr.bf16.mxu0 %v1128_v41  ;;  %1138 = vmatprep.subr.bf16.mxu1 %v1128_v41 }
 0x2e1   :  { %v1195_v43 = vpop.eup %1194  ;;  %1131 = vmatpush3.bf16.msra.mxu0 %v1128_v41  ;;  %1142 = vmatpush3.bf16.msra.mxu1 %v1128_v41 }
 0x2e2   :  { %v1132_v44 = vpack.c.bf16 %v1193_v42, %v1195_v43 }
 0x2e4   :  { %1133 = vmatprep.subr.bf16.mxu0 %v1132_v44  ;;  %1139 = vmatprep.subr.bf16.mxu1 %v1132_v44 }
 0x2e5   :  { %1135 = vmatpush3.bf16.msra.mxu0 %v1132_v44  ;;  %1143 = vmatpush3.bf16.msra.mxu1 %v1132_v44 }
 0x2e8   :  { %1069 = vmatmul.mubr.msk.f32.vlgmr.msra.gmra.mrb[16].mxu0 %vm287_vm1, %v619_v45  ;;  %1072 = vmatmul.mubr.msk.f32.vlgmr.msra.gmra.mrb[8].mxu1 %vm287_vm1, %v621_v46 }
 0x2e9   :  { %1074 = vmatprep.mubr.msk.f32.mxu1 %vm287_vm1, %v622_v47 }
 0x2ec   :  { %1075 = vmatmul.mubr.msk.f32.gmra.mrb[10].mxu1 %vm287_vm1, %v623_v48 }
 0x2ed   :  { %1077 = vmatprep.mubr.msk.f32.mxu1 %vm287_vm1, %v624_v49 }
 0x2f0   :  { %1078 = vmatmul.mubr.msk.f32.gmra.mrb[12].mxu1 %vm287_vm1, %v625_v50 }
 0x3bb   :  { %v1070_v57 = vpop.f32.mrb[16].mxu0  ;;  %v1073_v58 = vpop.f32.mrb[8].mxu1 }
 0x3bc   :  { %v770_v59 = vadd.f32 %v1070_v57, %v642_v53  ;;  %v780_v60 = vadd.f32 %v1073_v58, %v652_v56  ;;  %v764_v61 = vpop.f32.mrb[17].mxu0  ;;  %v774_v62 = vpop.f32.mrb[9].mxu1 }
 0x3bd   :  { %v765_v0 = vadd.f32 %v764_v61, %v637_v51  ;;  %v775_v1 = vadd.f32 %v774_v62, %v647_v54 }
 0x3be   :  { %1196 = vtanh.f32 %v770_v59 }
 0x3bf   :  { %1198 = vtanh.f32 %v780_v60  ;;  %v1076_v2 = vpop.f32.mrb[10].mxu1 }
 0x3c0   :  { %1200 = vtanh.f32 %v765_v0  ;;  %v790_v3 = vadd.f32 %v1076_v2, %v662_v55  ;;  %v784_v4 = vpop.f32.mrb[11].mxu1 }
 0x3c1   :  { %1202 = vtanh.f32 %v775_v1  ;;  %v785_v5 = vadd.f32 %v784_v4, %v657_v52 }
 0x3c2   :  { %1204 = vtanh.f32 %v790_v3 }
 0x3c3   :  { %1206 = vtanh.f32 %v785_v5  ;;  %v1079_v7 = vpop.f32.mrb[12].mxu1 }
 0x3c4   :  { %v800_v8 = vadd.f32 %v1079_v7, %v672_v6  ;;  %v794_v9 = vpop.f32.mrb[13].mxu1 }
 0x3c5   :  { %v795_v10 = vadd.f32 %v794_v9, %v667_v63 }
 0x3c6   :  { %1208 = vtanh.f32 %v800_v8 }
 0x3c7   :  { %1210 = vtanh.f32 %v795_v10 }
 0x3c8   :  { %v1197_v11 = vpop.eup %1196 }
 0x3c9   :  { %v1199_v12 = vpop.eup %1198  ;;  %v825_v13 = vmul.f32 %v1197_v11, %v1197_v11 }
 0x3ca   :  { %v1201_v14 = vpop.eup %1200  ;;  %v827_v25 = vmul.f32 %v1199_v12, %v1199_v12 }
 0x3cb   :  { %v1203_v15 = vpop.eup %1202  ;;  %v824_v16 = vmul.f32 %v1201_v14, %v1201_v14 }
 0x3cc   :  { %v1205_v17 = vpop.eup %1204  ;;  %v826_v20 = vmul.f32 %v1203_v15, %v1203_v15 }
 0x3cd   :  { %v1207_v18 = vpop.eup %1206  ;;  %v828_v19 = vadd.f32 %v825_v13, %v824_v16  ;;  %v812_v21 = vmul.f32 %v1205_v17, %v1197_v11  ;;  %v846_v22 = vmul.f32 %v1205_v17, %v1205_v17 }
 0x3ce   :  { %v811_v23 = vmul.f32 %v1207_v18, %v1201_v14  ;;  %v845_v24 = vmul.f32 %v1207_v18, %v1207_v18 }
 0x3cf   :  { %v829_v26 = vadd.f32 %v828_v19, %v826_v20 }
 0x3d0   :  { %v1209_v27 = vpop.eup %1208  ;;  %v815_v28 = vadd.f32 %v812_v21, %v811_v23  ;;  %v849_v29 = vadd.f32 %v846_v22, %v845_v24 }
 0x3d1   :  { %v1211_v30 = vpop.eup %1210  ;;  %v830_v31 = vadd.f32 %v829_v26, %v827_v25  ;;  %v814_v32 = vmul.f32 %v1209_v27, %v1199_v12  ;;  %v848_v36 = vmul.f32 %v1209_v27, %v1209_v27 }
 0x3d2   :  { %v813_v33 = vmul.f32 %v1211_v30, %v1203_v15  ;;  %v847_v34 = vmul.f32 %v1211_v30, %v1211_v30 }
 0x3d3   :  { %v831_v35 = vrot.slane %v830_v31, 4 }
 0x3d4   :  { %v850_v37 = vadd.f32 %v849_v29, %v847_v34  ;;  %v816_v38 = vadd.f32 %v815_v28, %v813_v33 }
 0x3d5   :  { %v832_v39 = vadd.f32 %v831_v35, %v830_v31 }
 0x3d6   :  { %v851_v40 = vadd.f32 %v850_v37, %v848_v36  ;;  %v817_v41 = vadd.f32 %v816_v38, %v814_v32 }
 0x3d7   :  { %v833_v42 = vrot.slane %v832_v39, 2 }
 0x3d8   :  { %v852_v43 = vrot.slane %v851_v40, 4  ;;  %v818_v54 = vrot.slane %v817_v41, 4 }
 0x3d9   :  { %v834_v44 = vadd.f32 %v833_v42, %v832_v39 }
 0x3da   :  { %v853_v45 = vadd.f32 %v852_v43, %v851_v40  ;;  %v819_v59 = vadd.f32 %v818_v54, %v817_v41 }
 0x3db   :  { %v835_v46 = vrot.slane %v834_v44, 1 }
 0x3dc   :  { %v854_v47 = vrot.slane %v853_v45, 2  ;;  %v820_v2 = vrot.slane %v819_v59, 2 }
 0x3dd   :  { %v836_v48 = vadd.f32 %v835_v46, %v834_v44 }
 0x3de   :  { %v855_v49 = vadd.f32 %v854_v47, %v853_v45  ;;  %v821_v4 = vadd.f32 %v820_v2, %v819_v59 }
 0x3df   :  { %1212 = vrsqrt.f32 %v836_v48  ;;  %vm839_vm2 = vcmp.eq.f32.partialorder %v836_v48, inf  ;;  %v842_v57 = vand.u32 2147483648, %v836_v48  ;;  %vm841_vm3 = vcmp.eq.f32.partialorder %v836_v48, 0.0 }
 0x3e0   :  { %v856_v50 = vrot.slane %v855_v49, 1  ;;  %v822_v5 = vrot.slane %v821_v4, 1 }
 0x3e2   :  { %v857_v51 = vadd.f32 %v856_v50, %v855_v49  ;;  %v823_v6 = vadd.f32 %v822_v5, %v821_v4 }
 0x3e4   :  { %1214 = vrsqrt.f32 %v857_v51  ;;  %vm860_vm4 = vcmp.eq.f32.partialorder %v857_v51, inf  ;;  %v863_v61 = vand.u32 2147483648, %v857_v51  ;;  %vm862_vm5 = vcmp.eq.f32.partialorder %v857_v51, 0.0 }
 0x3e9   :  { %v1213_v52 = vpop.eup %1212 }
 0x3ea   :  { %v838_v53 = vmul.f32 %v1213_v52, %v836_v48 }
 0x3ec   :  { %v840_v55 = vsel %vm839_vm2, %v836_v48, %v838_v53 }
 0x3ed   :  { %v843_v60 = vsel %vm841_vm3, %v842_v57, %v840_v55 }
 0x3ee   :  { %v1215_v56 = vpop.eup %1214  ;;  %v844_v0 = vmax.f32 %v843_v60, 1e-08 }
 0x3ef   :  { %v859_v58 = vmul.f32 %v1215_v56, %v857_v51 }
 0x3f1   :  { %v861_v62 = vsel %vm860_vm4, %v857_v51, %v859_v58 }
 0x3f2   :  { %v864_v63 = vsel %vm862_vm5, %v863_v61, %v861_v62 }
 0x3f3   :  { %v865_v1 = vmax.f32 %v864_v63, 1e-08 }
 0x3f5   :  { %v866_v3 = vmul.f32 %v865_v1, %v844_v0 }
 0x3f7   :  { %1216 = vrcp.f32 %v866_v3 }
 0x401   :  { %v1217_v7 = vpop.eup %1216 }
 0x402   :  { %v868_v8 = vmul.f32 %v1217_v7, %v823_v6 }
 0x404   :  { %869 = vst [vmem:[#allocation2] sm:$0x1] %v868_v8 }
 0x405   :  { %1229 = shalt.err (!%p1226_p4)
}
 0x406   :  { %s1230_s21 = scalar_lea.hbm %s1551_s9, 16 }
 0x407   :  { %p1231_p5 = scmp.ne.s32.totalorder %s1551_s9, %s1230_s21  ;;  %p1234_p6 = scmp.lt.u32.totalorder %s1230_s21, %s1551_s9 }
 0x409   :  { %p1236_p7 = pnand %p1234_p6, %p1231_p5 }
 0x40b   :  { %1239 = shalt.err (!%p1236_p7)
}
 0x40c   :  { %879 = dma.vmem_to_hbm [thread:$0]  %s877_s17, 16, %s1551_s9, [#allocation3]  }
 0x40d   :  { %1240 = dma.done.wait [#allocation3], 16  }
 0x40e   :  { %1241 = vsyncadd [#allocation3], 4294967280 }
 0x40f   :  { %883 = vsyncpa [#allocation3], 1 }

</bundles_post_ra>
